<compile_context>
chip_gen: v5e
topology: v5e:2x2
jax: 0.10.0
libtpu: 0.0.40
codegen_flags: <defaults>
</compile_context>

<pallas_src>
import functools

import jax
import jax.numpy as jnp
from jax.experimental import pallas as pl
from jax.experimental.pallas import tpu as pltpu


# ----------------------------------------------------------------------------
# Generation-aware VMEM budgeting.
# ----------------------------------------------------------------------------
@functools.lru_cache(maxsize=None)
def _vmem_budgets():
    """Returns (vmem_limit_bytes, affine_block_bytes, stats_block_bytes)."""
    cap = 64 * 1024 * 1024  # conservative default (v7x per-TC VMEM)
    try:
        info = pltpu.get_tpu_info()
        cap_attr = getattr(info, "vmem_capacity_bytes", None)
        if cap_attr:
            cap = int(cap_attr)
    except Exception:  # non-TPU / interpret mode: keep conservative default
        pass
    # Leave headroom for compiler temps / pipelining bookkeeping.
    vmem_limit = min(cap * 3 // 4, 96 * 1024 * 1024)
    # Affine pass pipelines 4 big buffers (x, y double-buffered) + temps.
    affine_block = min(8 * 1024 * 1024, vmem_limit // 6)
    # Stats pass pipelines ~2 big buffers (x double-buffered) + f32 temps.
    stats_block = min(12 * 1024 * 1024, vmem_limit // 4)
    return vmem_limit, affine_block, stats_block


def _pick_tiles(rows, hw, elt_bytes, max_block_bytes):
    """Pick (row_tile, hw_tile): lane-dense, (8,128)-aligned or full-extent
    tiles fitting max_block_bytes.  Grids use pl.cdiv, so no divisibility
    requirement on the array shape."""
    budget_elems = max(8 * 128, max_block_bytes // max(1, elt_bytes))
    # Lane (last-dim) tile first: lane-dense blocks are the big lever.
    if hw <= 128:
        hw_t = hw                                    # full extent
    else:
        lane_cap = max(128, (budget_elems // 8) // 128 * 128)
        hw_t = hw if hw <= lane_cap else lane_cap    # full extent or /128 tile
    # Sublane (row) tile with the remaining budget.
    row_cap = max(8, (budget_elems // max(1, hw_t)) // 8 * 8)
    row_t = rows if rows <= row_cap else row_cap     # full extent or /8 tile
    return row_t, hw_t


# ----------------------------------------------------------------------------
# Kernel 1 (init only): per-row streaming moments.
#   x block: (row_t, hw_t)    c block: (row_t, 1)  [f32 per-row center]
#   outputs: sum(x - c), sum((x - c)^2) per row, accumulated directly into the
#   resident (row_t, 1) output blocks across the hw grid axis.
# ----------------------------------------------------------------------------
def _moments_kernel(x_ref, c_ref, sum_ref, sq_ref, *, hw, hw_t):
    j = pl.program_id(1)

    @pl.when(j == 0)
    def _():
        sum_ref[...] = jnp.zeros_like(sum_ref)
        sq_ref[...] = jnp.zeros_like(sq_ref)

    x = x_ref[...].astype(jnp.float32) - c_ref[...]            # (row_t, hw_t)
    if hw % hw_t != 0:
        # Tail lane block: zero out-of-bounds lanes before reducing so the
        # per-row sums are not polluted by padding garbage.
        lane = jax.lax.broadcasted_iota(jnp.int32, x.shape, 1) + j * hw_t
        x = jnp.where(lane < hw, x, 0.0)
    # TODO(synk): accumulate (row_t, 128) per-lane partials and reduce across
    # lanes once at the end to keep the per-step cross-lane reduce off the XLU
    # (init-only pass, HBM-bound, so low priority).
    sum_ref[...] += jnp.sum(x, axis=1, keepdims=True)
    sq_ref[...] += jnp.sum(x * x, axis=1, keepdims=True)


def _row_moments(x2, center_rows, *, row_t=None, hw_t=None):
    rows, hw = x2.shape
    vmem_limit, _, stats_block = _vmem_budgets()
    if row_t is None or hw_t is None:
        # Stats math runs in f32 regardless of input dtype -> budget as f32.
        auto_row, auto_hw = _pick_tiles(rows, hw, max(4, x2.dtype.itemsize),
                                        stats_block)
        row_t = auto_row if row_t is None else row_t
        hw_t = auto_hw if hw_t is None else hw_t
    grid = (pl.cdiv(rows, row_t), pl.cdiv(hw, hw_t))
    return pl.pallas_call(
        functools.partial(_moments_kernel, hw=hw, hw_t=hw_t),
        out_shape=(jax.ShapeDtypeStruct((rows, 1), jnp.float32),
                   jax.ShapeDtypeStruct((rows, 1), jnp.float32)),
        grid=grid,
        in_specs=[pl.BlockSpec((row_t, hw_t), lambda i, j: (i, j)),
                  pl.BlockSpec((row_t, 1), lambda i, j: (i, 0))],
        out_specs=(pl.BlockSpec((row_t, 1), lambda i, j: (i, 0)),
                   pl.BlockSpec((row_t, 1), lambda i, j: (i, 0))),
        compiler_params=pltpu.CompilerParams(
            # Row axis is parallel (each row block owns its own resident
            # output accumulator -> megacore-safe); the hw reduction axis
            # stays sequential and last.
            dimension_semantics=("parallel", "arbitrary"),
            vmem_limit_bytes=vmem_limit),
    )(x2, center_rows)


# ----------------------------------------------------------------------------
# Kernel 2 (hot path): elementwise affine  y = x * scale[row] + shift[row].
#   x/y block: (row_t, hw_t)    scale/shift block: (row_t, 1)  [f32]
# ----------------------------------------------------------------------------
def _affine_kernel(x_ref, scale_ref, shift_ref, y_ref):
    x = x_ref[...]
    # Cast the tiny (row_t, 1) params to the input dtype so the big FMA runs
    # natively (bf16 stays bf16 on v6e/v7x; f32 stays f32; v5e bf16 inputs get
    # upcast by Mosaic internally).
    s = scale_ref[...].astype(x.dtype)
    b = shift_ref[...].astype(x.dtype)
    y_ref[...] = x * s + b


def _apply_affine(x2, scale_rows, shift_rows, *, row_t=None, hw_t=None):
    rows, hw = x2.shape
    vmem_limit, affine_block, _ = _vmem_budgets()
    if row_t is None or hw_t is None:
        auto_row, auto_hw = _pick_tiles(rows, hw, x2.dtype.itemsize,
                                        affine_block)
        row_t = auto_row if row_t is None else row_t
        hw_t = auto_hw if hw_t is None else hw_t
    grid = (pl.cdiv(rows, row_t), pl.cdiv(hw, hw_t))
    return pl.pallas_call(
        _affine_kernel,
        out_shape=jax.ShapeDtypeStruct((rows, hw), x2.dtype),
        grid=grid,
        in_specs=[pl.BlockSpec((row_t, hw_t), lambda i, j: (i, j)),
                  pl.BlockSpec((row_t, 1), lambda i, j: (i, 0)),
                  pl.BlockSpec((row_t, 1), lambda i, j: (i, 0))],
        out_specs=pl.BlockSpec((row_t, hw_t), lambda i, j: (i, j)),
        compiler_params=pltpu.CompilerParams(
            dimension_semantics=("parallel", "parallel"),
            vmem_limit_bytes=vmem_limit),
    )(x2, scale_rows, shift_rows)


# ----------------------------------------------------------------------------
# Module wrapper mirroring the PyTorch ActNorm2D semantics.
# ----------------------------------------------------------------------------
class ActNorm2D:
    def __init__(self, num_channels, eps=1e-5):
        self.eps = eps
        self.num_channels = num_channels
        self._log_scale = jnp.zeros((num_channels,), jnp.float32)
        self._shift = jnp.zeros((num_channels,), jnp.float32)
        self._scale = jnp.ones((num_channels,), jnp.float32)   # exp(log_scale)
        # Python-side first-call init flag (matches the PyTorch module).
        # TODO(synk): not jit/trace-safe if forward() itself is wrapped in jax.jit.
        self._init = False

    def _data_init(self, x2, N, C, HW):
        rows = N * C
        total = float(N * HW)
        # Two-pass mean / centered-variance (matches the PyTorch reference
        # numerics; avoids E[x^2]-E[x]^2 cancellation).  Init-only cost.
        zero_c = jnp.zeros((rows, 1), jnp.float32)
        row_sum, _ = _row_moments(x2, zero_c)
        mean = row_sum.reshape(N, C).sum(axis=0) / total                 # (C,)
        mean_rows = jnp.broadcast_to(mean[None, :], (N, C)).reshape(rows, 1)
        _, row_sq = _row_moments(x2, mean_rows)
        var = row_sq.reshape(N, C).sum(axis=0) / total                   # (C,)
        log_scale = -0.5 * jnp.log(var + self.eps)                # log(1/std)
        scale = jnp.exp(log_scale)
        self._log_scale = log_scale
        self._scale = scale
        self._shift = -mean * scale
        self._init = True

    def forward(self, x):
        # x: NCHW
        N, C, H, W = x.shape
        assert C == self.num_channels
        HW = H * W
        rows = N * C
        x2 = x.reshape(rows, HW)                 # zero-copy view, no transpose

        if not self._init:
            self._data_init(x2, N, C, HW)

        scale_rows = jnp.broadcast_to(self._scale[None, :], (N, C)).reshape(rows, 1)
        shift_rows = jnp.broadcast_to(self._shift[None, :], (N, C)).reshape(rows, 1)
        y2 = _apply_affine(x2, scale_rows, shift_rows)
        y = y2.reshape(N, C, H, W)               # zero-copy

        # logdet = sum(log_scale) * H * W   (C-element sum: glue, not hot path)
        logdet = jnp.sum(self._log_scale) * (H * W)
        return y, logdet

    def inverse(self, x):
        ls = self._log_scale[None, :, None, None]
        sh = self._shift[None, :, None, None]
        return (x - sh) * jnp.exp(-ls)


# ----------------------------------------------------------------------------
# Pure-JAX reference for the first (init) forward call.
# ----------------------------------------------------------------------------
def _ref_forward_init(x, eps):
    C = x.shape[1]
    xt = jnp.transpose(x, (1, 0, 2, 3)).reshape(C, -1)
    mean = xt.mean(axis=1)
    var = ((xt - mean[:, None]) ** 2).mean(axis=1)
    log_scale = jnp.log(1.0 / jnp.sqrt(var + eps))
    shift = -mean * jnp.exp(log_scale)
    y = x * jnp.exp(log_scale)[None, :, None, None] + shift[None, :, None, None]
    logdet = log_scale.sum() * x.shape[2] * x.shape[3]
    return y, logdet


if __name__ == "__main__":
    key = jax.random.PRNGKey(0)
    N, C, H, W = 2, 4, 16, 16
    x = 2.0 * jax.random.normal(key, (N, C, H, W), dtype=jnp.float32) + 1.0

    mod = ActNorm2D(num_channels=C, eps=1e-5)
    y, logdet = mod.forward(x)
    y = jax.block_until_ready(y)
    logdet = jax.block_until_ready(logdet)

    y_ref, logdet_ref = _ref_forward_init(x, 1e-5)
    assert jnp.allclose(y, y_ref, atol=1e-4, rtol=1e-4), "output mismatch"
    assert jnp.allclose(logdet, logdet_ref, atol=1e-3, rtol=1e-4), "logdet mismatch"

    # Second call: steady-state path using stored params (no re-init).
    y2, logdet2 = mod.forward(x)
    y2 = jax.block_until_ready(y2)
    assert jnp.allclose(y2, y_ref, atol=1e-4, rtol=1e-4), "steady-state mismatch"

    # Exercise the cdiv + masked-tail path with forced small tiles
    # (rows not a multiple of 8, HW not a multiple of 128).
    rows_t, HW_t = 12, 400
    xt = jax.random.normal(jax.random.PRNGKey(1), (rows_t, HW_t), jnp.float32)
    zc = jnp.zeros((rows_t, 1), jnp.float32)
    s_out, q_out = _row_moments(xt, zc, row_t=8, hw_t=128)
    s_out = jax.block_until_ready(s_out)
    assert jnp.allclose(s_out[:, 0], xt.sum(axis=1), atol=1e-3, rtol=1e-4)
    assert jnp.allclose(q_out[:, 0], (xt * xt).sum(axis=1), atol=1e-3, rtol=1e-4)
    sc = jnp.linspace(0.5, 1.5, rows_t).reshape(rows_t, 1).astype(jnp.float32)
    sh = jnp.linspace(-1.0, 1.0, rows_t).reshape(rows_t, 1).astype(jnp.float32)
    yt = _apply_affine(xt, sc, sh, row_t=8, hw_t=128)
    yt = jax.block_until_ready(yt)
    assert jnp.allclose(yt, xt * sc + sh, atol=1e-5, rtol=1e-5)

    print("KERNEL_OK")
</pallas_src>

<mosaic_0001>
module attributes {stable_mosaic.version = 11 : i64} {
  func.func @_moments_kernel(%arg0: i32, %arg1: i32, %arg2: memref<8x256xf32, #tpu.memory_space<vmem>>, %arg3: memref<8x1xf32, #tpu.memory_space<vmem>>, %arg4: memref<8x1xf32, #tpu.memory_space<vmem>>, %arg5: memref<8x1xf32, #tpu.memory_space<vmem>>) attributes {dimension_semantics = [#tpu.dimension_semantics<parallel>, #tpu.dimension_semantics<arbitrary>], iteration_bounds = array<i64: 1, 1>, scalar_prefetch = 0 : i64, scratch_operands = 0 : i64, tpu.core_type = #tpu.core_type<tc>, window_params = [{transform_indices = @transform_0, window_bounds = array<i64: 8, 256>}, {transform_indices = @transform_1, window_bounds = array<i64: 8, 1>}, {transform_indices = @transform_2, window_bounds = array<i64: 8, 1>}, {transform_indices = @transform_3, window_bounds = array<i64: 8, 1>}]} {
    %c0_i32 = arith.constant 0 : i32
    %0 = arith.cmpi eq, %arg1, %c0_i32 : i32
    %1 = arith.extui %0 : i1 to i32
    %c0_i32_0 = arith.constant 0 : i32
    %2 = arith.cmpi ne, %1, %c0_i32_0 : i32
    scf.if %2 {
      %cst_13 = arith.constant 0.000000e+00 : f32
      %18 = vector.broadcast %cst_13 : f32 to vector<8x1xf32>
      %c0_14 = arith.constant 0 : index
      %c0_15 = arith.constant 0 : index
      %19 = vector.load %arg4[%c0_14, %c0_15] : memref<8x1xf32, #tpu.memory_space<vmem>>, vector<8x1xf32>
      tpu.vector_store %arg4[%c0_14, %c0_15], %18 {strides = array<i32>} : memref<8x1xf32, #tpu.memory_space<vmem>>, vector<8x1xf32>,
      %cst_16 = arith.constant 0.000000e+00 : f32
      %20 = vector.broadcast %cst_16 : f32 to vector<8x1xf32>
      %c0_17 = arith.constant 0 : index
      %c0_18 = arith.constant 0 : index
      %21 = vector.load %arg5[%c0_17, %c0_18] : memref<8x1xf32, #tpu.memory_space<vmem>>, vector<8x1xf32>
      tpu.vector_store %arg5[%c0_17, %c0_18], %20 {strides = array<i32>} : memref<8x1xf32, #tpu.memory_space<vmem>>, vector<8x1xf32>,
    } else {
    }
    %c0 = arith.constant 0 : index
    %c0_1 = arith.constant 0 : index
    %3 = vector.load %arg2[%c0, %c0_1] : memref<8x256xf32, #tpu.memory_space<vmem>>, vector<8x256xf32>
    %c0_2 = arith.constant 0 : index
    %c0_3 = arith.constant 0 : index
    %4 = vector.load %arg3[%c0_2, %c0_3] : memref<8x1xf32, #tpu.memory_space<vmem>>, vector<8x1xf32>
    %5 = vector.broadcast %4 : vector<8x1xf32> to vector<8x256xf32>
    %6 = arith.subf %3, %5 : vector<8x256xf32>
    %c0_4 = arith.constant 0 : index
    %c0_5 = arith.constant 0 : index
    %7 = vector.load %arg4[%c0_4, %c0_5] : memref<8x1xf32, #tpu.memory_space<vmem>>, vector<8x1xf32>
    %cst = arith.constant dense<0.000000e+00> : vector<8xf32>
    %8 = vector.multi_reduction <add>, %6, %cst [1] : vector<8x256xf32> to vector<8xf32>
    %9 = vector.shape_cast %8 : vector<8xf32> to vector<8x1xf32>
    %10 = arith.addf %7, %9 : vector<8x1xf32>
    %c0_6 = arith.constant 0 : index
    %c0_7 = arith.constant 0 : index
    %11 = vector.load %arg4[%c0_6, %c0_7] : memref<8x1xf32, #tpu.memory_space<vmem>>, vector<8x1xf32>
    tpu.vector_store %arg4[%c0_6, %c0_7], %10 {strides = array<i32>} : memref<8x1xf32, #tpu.memory_space<vmem>>, vector<8x1xf32>,
    %c0_8 = arith.constant 0 : index
    %c0_9 = arith.constant 0 : index
    %12 = vector.load %arg5[%c0_8, %c0_9] : memref<8x1xf32, #tpu.memory_space<vmem>>, vector<8x1xf32>
    %13 = arith.mulf %6, %6 : vector<8x256xf32>
    %cst_10 = arith.constant dense<0.000000e+00> : vector<8xf32>
    %14 = vector.multi_reduction <add>, %13, %cst_10 [1] : vector<8x256xf32> to vector<8xf32>
    %15 = vector.shape_cast %14 : vector<8xf32> to vector<8x1xf32>
    %16 = arith.addf %12, %15 : vector<8x1xf32>
    %c0_11 = arith.constant 0 : index
    %c0_12 = arith.constant 0 : index
    %17 = vector.load %arg5[%c0_11, %c0_12] : memref<8x1xf32, #tpu.memory_space<vmem>>, vector<8x1xf32>
    tpu.vector_store %arg5[%c0_11, %c0_12], %16 {strides = array<i32>} : memref<8x1xf32, #tpu.memory_space<vmem>>, vector<8x1xf32>,
    return
  }
  func.func @transform_0(%arg0: i32, %arg1: i32) -> (i32, i32) {
    %c0_i32 = arith.constant 0 : i32
    return %arg0, %arg1 : i32, i32
  }
  func.func @transform_1(%arg0: i32, %arg1: i32) -> (i32, i32) {
    %c0_i32 = arith.constant 0 : i32
    %c0_i32_0 = arith.constant 0 : i32
    return %arg0, %c0_i32 : i32, i32
  }
  func.func @transform_2(%arg0: i32, %arg1: i32) -> (i32, i32) {
    %c0_i32 = arith.constant 0 : i32
    %c0_i32_0 = arith.constant 0 : i32
    return %arg0, %c0_i32 : i32, i32
  }
  func.func @transform_3(%arg0: i32, %arg1: i32) -> (i32, i32) {
    %c0_i32 = arith.constant 0 : i32
    %c0_i32_0 = arith.constant 0 : i32
    return %arg0, %c0_i32 : i32, i32
  }
}

</mosaic_0001>

<bundles_post_ra>
// kernel: tpu_custom_call.1
= control target key start
LH: loop header
LB: loop body
LE: loop exit
PB: predicated region body
PF: predicated region fallthrough
CT: control target
= control target key end

     0   :  { %9 = vsyncpa [#allocation3], 0  ;;  %s98_s15 = smov [#allocation2]   ;;  %s149_s0 = inlined_call_operand.hbm [shape: f32[8,256], index: 0, kind: input, shape index: {}]   ;;  %s150_s1 = inlined_call_operand.vmem [shape: f32[8,1], index: 1, kind: input, shape index: {}]   ;;  %s151_s2 = inlined_call_operand.vmem [shape: f32[8,1], index: 2, kind: output, shape index: {0}]   ;;  %s152_s3 = inlined_call_operand.vmem [shape: f32[8,1], index: 3, kind: output, shape index: {1}]  }
   0x1   :  { %s15_s14 = sshll.u32 %s149_s0, 4  ;;  %s17_s16 = sshll.u32 %s98_s15, 4  ;;  %s16_s14 = int_to_ptr.hbm [resolvable:$true] %s15_s14  ;;  %s18_s16 = int_to_ptr.vmem [resolvable:$true] %s17_s16 }
   0x2   :  { %20 = dma.hbm_to_vmem [thread:$0]  %s16_s14, 256, %s18_s16, [#allocation3]  }
   0x3   :  { %96 = dma.done.wait [#allocation3], 256  }
   0x4   :  { %97 = vsyncadd [#allocation3], 4294967040  ;;  %v99_v0 = vmov 0   ;;  %v36_v1 = vld [vmem:[%s150_s1] sm:$0xff]  ;;  %vm31_vm0 = vcmask 7168   ;;  %v100_v2 = vmov 0.0  }
   0x5   :  { %71 = vset.pattern.permute.xlu0 %v99_v0  ;;  %32 = vst.msk [vmem:[%s151_s2] sm:$0xff] %vm31_vm0, %v100_v2  ;;  %v34_v3 = vld [vmem:[#allocation2] sm:$0xff]  ;;  %v35_v4 = vld [vmem:[#allocation2 + $0x8] sm:$0xff] }
   0x6   :  { %39 = vperm.xlu0 %71, %v36_v1   ;;  %33 = vst.msk [vmem:[%s152_s3] sm:$0xff] %vm31_vm0, %v100_v2 }
   0xc   :  { %v44_v12 = vld [vmem:[%s151_s2] sm:$0xff] }
   0xd   :  { %v51_v14 = vld [vmem:[%s152_s3] sm:$0xff] }
  0x78   :  { %v40_v5 = vpop.permute.xlu0 %39 }
  0x79   :  { %v42_v6 = vsub.f32 %v34_v3, %v40_v5  ;;  %v43_v7 = vsub.f32 %v35_v4, %v40_v5 }
  0x7b   :  { %v45_v8 = vadd.f32 %v43_v7, %v42_v6  ;;  %v52_v9 = vmul.f32 %v42_v6, %v42_v6  ;;  %v53_v10 = vmul.f32 %v43_v7, %v43_v7 }
  0x7d   :  { %46 = vadd.xlane.f32.xlu0 %v45_v8  ;;  %v54_v11 = vadd.f32 %v53_v10, %v52_v9 }
  0x7f   :  { %55 = vadd.xlane.f32.xlu1 %v54_v11 }
  0xf0   :  { %v47_v13 = vpop.xlane.xlu0 %46 }
  0xf1   :  { %v48_v15 = vadd.f32 %v47_v13, %v44_v12 }
  0xf2   :  { %v56_v16 = vpop.xlane.xlu1 %55 }
  0xf3   :  { %50 = vst.msk [vmem:[%s151_s2] sm:$0xff] %vm31_vm0, %v48_v15  ;;  %v57_v17 = vadd.f32 %v56_v16, %v51_v14 }
  0xf5   :  { %58 = vst.msk [vmem:[%s152_s3] sm:$0xff] %vm31_vm0, %v57_v17 }
  0xf6   :  { %67 = vsyncpa [#allocation3], 1 }

</bundles_post_ra>
